<compile_context>
chip_gen: v7x
topology: tpu7x:2x2x1
jax: 0.10.0
libtpu: 0.0.40
codegen_flags: <defaults>
</compile_context>

<pallas_src>
import jax
import jax.numpy as jnp
from jax.experimental import pallas as pl
from jax.experimental.pallas import tpu as pltpu


def _round_up(n, m):
    return ((n + m - 1) // m) * m


def _hw_hints():
    """Returns (per-step VMEM budget in bytes, #TensorCores to spread grid over)."""
    vmem_cap = 64 * 1024 * 1024          # safe floor (v7x per-TC VMEM)
    n_cores = 1
    try:
        vmem_cap = int(getattr(pltpu.get_tpu_info(), "vmem_capacity_bytes",
                               vmem_cap))
    except Exception:
        pass
    try:
        kind = jax.devices()[0].device_kind.lower()
        if "v7" in kind or "7x" in kind:
            n_cores = 2
            vmem_cap = min(vmem_cap, 64 * 1024 * 1024)
    except Exception:
        pass
    return int(vmem_cap * 0.75), n_cores


def _step_vmem_bytes(bt, seq, sent_in, n_key, ab_in, att, x_bytes, ab_bytes,
                     w_bytes):
    """Rough per-grid-step VMEM footprint (pipeline buffers + kernel temps)."""
    x_blk = seq * bt * sent_in * x_bytes
    ab_blk = n_key * bt * ab_in * ab_bytes
    w_blk = (sent_in + ab_in) * att * w_bytes + 2 * att * 4
    out_blk = bt * sent_in * 4
    pipe = 2 * (x_blk + ab_blk + w_blk + out_blk)       # double-buffered blocks
    temps = seq * bt * sent_in * w_bytes                # lhs cast copy for MXU
    temps += (seq + n_key) * bt * att * 4               # mu, mv (f32)
    temps += 4 * seq * bt * 4                           # score / exp / weight slabs
    temps += bt * sent_in * 4                           # f32 accumulator
    return pipe + temps


def _pick_b_tile(batch, seq, sent_in, n_key, ab_in, att, x_bytes, ab_bytes,
                 w_bytes, vmem_budget, n_cores):
    bt = _round_up(batch, 8)
    if bt > 256:
        bt = 128           # full MXU M (seq*bt >= 256) and large per-row DMA chunks
    if n_cores > 1 and batch > 8:
        # Keep at least `n_cores` grid steps so the "parallel" axis covers all TCs.
        bt = min(bt, max(8, _round_up(pl.cdiv(batch, n_cores), 8)))
    while bt > 8 and _step_vmem_bytes(bt, seq, sent_in, n_key, ab_in, att,
                                      x_bytes, ab_bytes, w_bytes) > vmem_budget:
        bt -= 8
    # TODO(synk): if even bt == 8 blows the budget (very long seq_len), add a
    # second "arbitrary" seq grid axis with an online-softmax accumulator.
    return bt


def _co_word_attn_kernel(x_ref, ab_ref, ws_ref, bs_ref, wa_ref, ba_ref, o_ref):
    # x_ref : (seq, bt, sent_in)  -- native layout, batch tile on sublanes
    # ab_ref: (key, bt, ab_in)    -- key-major so the key loop slices dim 0
    # ws_ref: (sent_in, att)  bs_ref: (1, att)   (weights already MXU dtype)
    # wa_ref: (ab_in, att)    ba_ref: (1, att)
    # o_ref : (bt, sent_in)
    seq, bt, sent_in = x_ref.shape
    n_key = ab_ref.shape[0]
    ab_in = ab_ref.shape[2]
    att = ws_ref.shape[1]
    mx_dtype = ws_ref.dtype          # MXU operand dtype (bf16 by default)

    x = x_ref[...]                   # (seq, bt, sent_in)
    ab = ab_ref[...]                 # (key, bt, ab_in)

    # mu = tanh(x @ Ws + bs): flatten (seq, bt) into the MXU M dimension.
    mu = jnp.dot(x.reshape(seq * bt, sent_in).astype(mx_dtype), ws_ref[...],
                 preferred_element_type=jnp.float32)
    mu = jnp.tanh(mu + bs_ref[...]).reshape(seq, bt, att)        # (seq, bt, att)

    # mv = tanh(ab @ Wa + ba): flatten (key, bt) into the MXU M dimension.
    mv = jnp.dot(ab.reshape(n_key * bt, ab_in).astype(mx_dtype), wa_ref[...],
                 preferred_element_type=jnp.float32)
    mv = jnp.tanh(mv + ba_ref[...]).reshape(n_key, bt, att)      # (key, bt, att)

    # Scores: max over keys of <mu, mv_k> along att (VPU + lane reduce; n_key is
    # tiny so a per-batch batched matmul would waste the MXU).  keepdims keeps
    # batch on sublanes, so no lane<->sublane relayout here or in the epilogue.
    s = jnp.sum(mu * mv[0][None, :, :], axis=2, keepdims=True)   # (seq, bt, 1)
    for k in range(1, n_key):                                    # static unroll
        s = jnp.maximum(s, jnp.sum(mu * mv[k][None, :, :], axis=2, keepdims=True))

    # Softmax over seq (axis 0), f32, exact reciprocal (denom is one tiny slab).
    m = jnp.max(s, axis=0, keepdims=True)                        # (1, bt, 1)
    e = jnp.exp(s - m)                                           # (seq, bt, 1)
    denom = jnp.sum(e, axis=0, keepdims=True)                    # (1, bt, 1)
    w = e * pl.reciprocal(denom)                                 # (seq, bt, 1)

    # Weighted sum over seq: broadcast-multiply (w already layout-aligned with x)
    # and slab reduce on the VPU.  f32 accumulation.
    out = jnp.sum(w * x.astype(jnp.float32), axis=0)             # (bt, sent_in)
    o_ref[...] = out.astype(o_ref.dtype)


def co_word_attention(x, ab, w_sent, b_sent, w_ab, b_ab,
                      *, b_tile=None, matmul_dtype=jnp.bfloat16):
    """
    x      : (seq_len, batch, sent_in_dim)   -- PyTorch convention, consumed in place
    ab     : (batch, max_n_key, ab_in_dim)
    w_sent : (att_dim, sent_in_dim)          -- nn.Linear weight layout
    b_sent : (att_dim,)
    w_ab   : (att_dim, ab_in_dim)
    b_ab   : (att_dim,)
    returns: (batch, sent_in_dim)
    matmul_dtype: MXU operand dtype (bf16 default; pass jnp.float32 for full f32).
    """
    seq_len, batch, sent_in = x.shape
    ab_batch, max_key, ab_in = ab.shape
    att_dim = w_sent.shape[0]
    assert ab_batch == batch
    if matmul_dtype is None:
        matmul_dtype = jnp.float32

    # Small glue only: weights transposed + cast to the MXU dtype once, biases
    # kept f32, ab reordered key-major.  x itself is NOT copied/padded/cast here.
    ws_t = jnp.transpose(w_sent, (1, 0)).astype(matmul_dtype)    # (sent_in, att)
    wa_t = jnp.transpose(w_ab, (1, 0)).astype(matmul_dtype)      # (ab_in, att)
    bs = b_sent.reshape(1, att_dim).astype(jnp.float32)
    ba = b_ab.reshape(1, att_dim).astype(jnp.float32)
    ab_t = jnp.transpose(ab, (1, 0, 2))                          # (key, batch, ab_in)

    vmem_budget, n_cores = _hw_hints()
    if b_tile is None:
        b_tile = _pick_b_tile(batch, seq_len, sent_in, max_key, ab_in, att_dim,
                              x.dtype.itemsize, ab_t.dtype.itemsize,
                              ws_t.dtype.itemsize, vmem_budget, n_cores)
    b_tile = min(max(8, _round_up(b_tile, 8)), _round_up(batch, 8))
    grid = (pl.cdiv(batch, b_tile),)   # ragged tail handled by Pallas masking

    out = pl.pallas_call(
        _co_word_attn_kernel,
        out_shape=jax.ShapeDtypeStruct((batch, sent_in), x.dtype),
        grid_spec=pltpu.PrefetchScalarGridSpec(
            num_scalar_prefetch=0,
            grid=grid,
            in_specs=[
                pl.BlockSpec((seq_len, b_tile, sent_in), lambda b: (0, b, 0)),
                pl.BlockSpec((max_key, b_tile, ab_in), lambda b: (0, b, 0)),
                pl.BlockSpec((sent_in, att_dim), lambda b: (0, 0)),
                pl.BlockSpec((1, att_dim), lambda b: (0, 0)),
                pl.BlockSpec((ab_in, att_dim), lambda b: (0, 0)),
                pl.BlockSpec((1, att_dim), lambda b: (0, 0)),
            ],
            out_specs=pl.BlockSpec((b_tile, sent_in), lambda b: (b, 0)),
        ),
        compiler_params=pltpu.CompilerParams(
            dimension_semantics=("parallel",),
            vmem_limit_bytes=int(vmem_budget),
        ),
    )(x, ab_t, ws_t, bs, wa_t, ba)

    # TODO(synk): PyTorch's output.squeeze() returns shape (sent_in,) when
    # batch == 1; we always return (batch, sent_in).
    return out


def _reference(x, ab, w_sent, b_sent, w_ab, b_ab):
    mu = jnp.tanh(jnp.einsum("sbi,ai->sba", x, w_sent) + b_sent)     # (seq,b,att)
    mv = jnp.tanh(jnp.einsum("bki,ai->bka", ab, w_ab) + b_ab)        # (b,key,att)
    mu = jnp.transpose(mu, (1, 0, 2))                                # (b,seq,att)
    att_w = jnp.einsum("bsa,bka->bsk", mu, mv)                       # (b,seq,key)
    att_w = jnp.max(att_w, axis=2)                                   # (b,seq)
    att_w = jax.nn.softmax(att_w, axis=1)
    xb = jnp.transpose(x, (1, 0, 2))                                 # (b,seq,in)
    return jnp.einsum("bs,bsi->bi", att_w, xb)


if __name__ == "__main__":
    seq_len = 8
    batch = 6            # not a multiple of 8 -> exercises the ragged-tail path
    sent_in_dim = 32
    ab_in_dim = 32
    att_dim = 32
    max_n_key = 8

    key = jax.random.PRNGKey(0)
    k_x, k_ab, k_ws, k_bs, k_wa, k_ba = jax.random.split(key, 6)

    x = jax.random.normal(k_x, (seq_len, batch, sent_in_dim), dtype=jnp.float32)
    ab = jax.random.normal(k_ab, (batch, max_n_key, ab_in_dim), dtype=jnp.float32)

    # nn.Linear parameter shapes: (out, in) and (out,)
    w_sent = jax.random.normal(k_ws, (att_dim, sent_in_dim), dtype=jnp.float32) * 0.1
    b_sent = jax.random.normal(k_bs, (att_dim,), dtype=jnp.float32) * 0.1
    w_ab = jax.random.normal(k_wa, (att_dim, ab_in_dim), dtype=jnp.float32) * 0.1
    b_ab = jax.random.normal(k_ba, (att_dim,), dtype=jnp.float32) * 0.1

    ref = jax.block_until_ready(_reference(x, ab, w_sent, b_sent, w_ab, b_ab))

    # Default path: bf16 MXU operands, f32 everything else.  Tolerance accounts
    # for bf16 rounding of the matmul operands (and for the fact that the XLA
    # reference itself may run reduced-precision f32 matmuls on TPU).
    out_bf16 = jax.block_until_ready(
        co_word_attention(x, ab, w_sent, b_sent, w_ab, b_ab))
    assert out_bf16.shape == (batch, sent_in_dim), out_bf16.shape
    assert jnp.allclose(out_bf16, ref, atol=5e-2, rtol=0.0), (out_bf16, ref)

    # Full-f32 MXU path (matmul_dtype=jnp.float32) also compiles and matches.
    out_f32 = jax.block_until_ready(
        co_word_attention(x, ab, w_sent, b_sent, w_ab, b_ab,
                          matmul_dtype=jnp.float32))
    assert out_f32.shape == (batch, sent_in_dim), out_f32.shape
    assert jnp.allclose(out_f32, ref, atol=5e-2, rtol=0.0), (out_f32, ref)

    print("KERNEL_OK")
</pallas_src>

<mosaic_0001>
module attributes {stable_mosaic.version = 11 : i64} {
  func.func @_co_word_attn_kernel(%arg0: i32, %arg1: memref<8x8x32xf32, #tpu.memory_space<vmem>>, %arg2: memref<8x8x32xf32, #tpu.memory_space<vmem>>, %arg3: memref<32x32xbf16, #tpu.memory_space<vmem>>, %arg4: memref<1x32xf32, #tpu.memory_space<vmem>>, %arg5: memref<32x32xbf16, #tpu.memory_space<vmem>>, %arg6: memref<1x32xf32, #tpu.memory_space<vmem>>, %arg7: memref<8x32xf32, #tpu.memory_space<vmem>>) attributes {dimension_semantics = [#tpu.dimension_semantics<parallel>], iteration_bounds = array<i64: 1>, scalar_prefetch = 0 : i64, scratch_operands = 0 : i64, tpu.core_type = #tpu.core_type<tc>, window_params = [{transform_indices = @transform_0, window_bounds = array<i64: 8, 8, 32>}, {transform_indices = @transform_1, window_bounds = array<i64: 8, 8, 32>}, {pipeline_mode = #tpu.pipeline_mode<synchronous>, transform_indices = @transform_2, window_bounds = array<i64: 32, 32>}, {pipeline_mode = #tpu.pipeline_mode<synchronous>, transform_indices = @transform_3, window_bounds = array<i64: 1, 32>}, {pipeline_mode = #tpu.pipeline_mode<synchronous>, transform_indices = @transform_4, window_bounds = array<i64: 32, 32>}, {pipeline_mode = #tpu.pipeline_mode<synchronous>, transform_indices = @transform_5, window_bounds = array<i64: 1, 32>}, {transform_indices = @transform_6, window_bounds = array<i64: 8, 32>}]} {
    %c0 = arith.constant 0 : index
    %c0_0 = arith.constant 0 : index
    %c0_1 = arith.constant 0 : index
    %0 = vector.load %arg1[%c0, %c0_0, %c0_1] : memref<8x8x32xf32, #tpu.memory_space<vmem>>, vector<8x8x32xf32>
    %c0_2 = arith.constant 0 : index
    %c0_3 = arith.constant 0 : index
    %c0_4 = arith.constant 0 : index
    %1 = vector.load %arg2[%c0_2, %c0_3, %c0_4] : memref<8x8x32xf32, #tpu.memory_space<vmem>>, vector<8x8x32xf32>
    %2 = vector.shape_cast %0 : vector<8x8x32xf32> to vector<64x32xf32>
    %3 = arith.truncf %2 : vector<64x32xf32> to vector<64x32xbf16>
    %c0_5 = arith.constant 0 : index
    %c0_6 = arith.constant 0 : index
    %4 = vector.load %arg3[%c0_5, %c0_6] : memref<32x32xbf16, #tpu.memory_space<vmem>>, vector<32x32xbf16>
    %cst = arith.constant dense<0.000000e+00> : vector<64x32xf32>
    %5 = tpu.matmul %3, %4, %cst {dimension_numbers = #tpu.dot_dimension_numbers<[1], [0], [0], [1], [0, 0, 1, 1], [], []>} : vector<64x32xbf16>, vector<32x32xbf16>, vector<64x32xf32> -> vector<64x32xf32>
    %c0_7 = arith.constant 0 : index
    %c0_8 = arith.constant 0 : index
    %6 = vector.load %arg4[%c0_7, %c0_8] : memref<1x32xf32, #tpu.memory_space<vmem>>, vector<1x32xf32>
    %7 = vector.broadcast %6 : vector<1x32xf32> to vector<64x32xf32>
    %8 = arith.addf %5, %7 : vector<64x32xf32>
    %9 = math.tanh %8 : vector<64x32xf32>
    %10 = vector.shape_cast %9 : vector<64x32xf32> to vector<8x8x32xf32>
    %11 = vector.shape_cast %1 : vector<8x8x32xf32> to vector<64x32xf32>
    %12 = arith.truncf %11 : vector<64x32xf32> to vector<64x32xbf16>
    %c0_9 = arith.constant 0 : index
    %c0_10 = arith.constant 0 : index
    %13 = vector.load %arg5[%c0_9, %c0_10] : memref<32x32xbf16, #tpu.memory_space<vmem>>, vector<32x32xbf16>
    %cst_11 = arith.constant dense<0.000000e+00> : vector<64x32xf32>
    %14 = tpu.matmul %12, %13, %cst_11 {dimension_numbers = #tpu.dot_dimension_numbers<[1], [0], [0], [1], [0, 0, 1, 1], [], []>} : vector<64x32xbf16>, vector<32x32xbf16>, vector<64x32xf32> -> vector<64x32xf32>
    %c0_12 = arith.constant 0 : index
    %c0_13 = arith.constant 0 : index
    %15 = vector.load %arg6[%c0_12, %c0_13] : memref<1x32xf32, #tpu.memory_space<vmem>>, vector<1x32xf32>
    %16 = vector.broadcast %15 : vector<1x32xf32> to vector<64x32xf32>
    %17 = arith.addf %14, %16 : vector<64x32xf32>
    %18 = math.tanh %17 : vector<64x32xf32>
    %19 = vector.shape_cast %18 : vector<64x32xf32> to vector<8x8x32xf32>
    %20 = vector.extract_strided_slice %19 {offsets = [0, 0, 0], sizes = [1, 8, 32], strides = [1, 1, 1]} : vector<8x8x32xf32> to vector<1x8x32xf32>
    %21 = vector.shape_cast %20 : vector<1x8x32xf32> to vector<8x32xf32>
    %22 = vector.shape_cast %21 : vector<8x32xf32> to vector<1x8x32xf32>
    %23 = vector.broadcast %22 : vector<1x8x32xf32> to vector<8x8x32xf32>
    %24 = arith.mulf %10, %23 : vector<8x8x32xf32>
    %cst_14 = arith.constant dense<0.000000e+00> : vector<8x8xf32>
    %25 = vector.multi_reduction <add>, %24, %cst_14 [2] : vector<8x8x32xf32> to vector<8x8xf32>
    %26 = vector.shape_cast %25 : vector<8x8xf32> to vector<8x8x1xf32>
    %27 = vector.extract_strided_slice %19 {offsets = [1, 0, 0], sizes = [1, 8, 32], strides = [1, 1, 1]} : vector<8x8x32xf32> to vector<1x8x32xf32>
    %28 = vector.shape_cast %27 : vector<1x8x32xf32> to vector<8x32xf32>
    %29 = vector.shape_cast %28 : vector<8x32xf32> to vector<1x8x32xf32>
    %30 = vector.broadcast %29 : vector<1x8x32xf32> to vector<8x8x32xf32>
    %31 = arith.mulf %10, %30 : vector<8x8x32xf32>
    %cst_15 = arith.constant dense<0.000000e+00> : vector<8x8xf32>
    %32 = vector.multi_reduction <add>, %31, %cst_15 [2] : vector<8x8x32xf32> to vector<8x8xf32>
    %33 = vector.shape_cast %32 : vector<8x8xf32> to vector<8x8x1xf32>
    %34 = arith.maximumf %26, %33 : vector<8x8x1xf32>
    %35 = vector.extract_strided_slice %19 {offsets = [2, 0, 0], sizes = [1, 8, 32], strides = [1, 1, 1]} : vector<8x8x32xf32> to vector<1x8x32xf32>
    %36 = vector.shape_cast %35 : vector<1x8x32xf32> to vector<8x32xf32>
    %37 = vector.shape_cast %36 : vector<8x32xf32> to vector<1x8x32xf32>
    %38 = vector.broadcast %37 : vector<1x8x32xf32> to vector<8x8x32xf32>
    %39 = arith.mulf %10, %38 : vector<8x8x32xf32>
    %cst_16 = arith.constant dense<0.000000e+00> : vector<8x8xf32>
    %40 = vector.multi_reduction <add>, %39, %cst_16 [2] : vector<8x8x32xf32> to vector<8x8xf32>
    %41 = vector.shape_cast %40 : vector<8x8xf32> to vector<8x8x1xf32>
    %42 = arith.maximumf %34, %41 : vector<8x8x1xf32>
    %43 = vector.extract_strided_slice %19 {offsets = [3, 0, 0], sizes = [1, 8, 32], strides = [1, 1, 1]} : vector<8x8x32xf32> to vector<1x8x32xf32>
    %44 = vector.shape_cast %43 : vector<1x8x32xf32> to vector<8x32xf32>
    %45 = vector.shape_cast %44 : vector<8x32xf32> to vector<1x8x32xf32>
    %46 = vector.broadcast %45 : vector<1x8x32xf32> to vector<8x8x32xf32>
    %47 = arith.mulf %10, %46 : vector<8x8x32xf32>
    %cst_17 = arith.constant dense<0.000000e+00> : vector<8x8xf32>
    %48 = vector.multi_reduction <add>, %47, %cst_17 [2] : vector<8x8x32xf32> to vector<8x8xf32>
    %49 = vector.shape_cast %48 : vector<8x8xf32> to vector<8x8x1xf32>
    %50 = arith.maximumf %42, %49 : vector<8x8x1xf32>
    %51 = vector.extract_strided_slice %19 {offsets = [4, 0, 0], sizes = [1, 8, 32], strides = [1, 1, 1]} : vector<8x8x32xf32> to vector<1x8x32xf32>
    %52 = vector.shape_cast %51 : vector<1x8x32xf32> to vector<8x32xf32>
    %53 = vector.shape_cast %52 : vector<8x32xf32> to vector<1x8x32xf32>
    %54 = vector.broadcast %53 : vector<1x8x32xf32> to vector<8x8x32xf32>
    %55 = arith.mulf %10, %54 : vector<8x8x32xf32>
    %cst_18 = arith.constant dense<0.000000e+00> : vector<8x8xf32>
    %56 = vector.multi_reduction <add>, %55, %cst_18 [2] : vector<8x8x32xf32> to vector<8x8xf32>
    %57 = vector.shape_cast %56 : vector<8x8xf32> to vector<8x8x1xf32>
    %58 = arith.maximumf %50, %57 : vector<8x8x1xf32>
    %59 = vector.extract_strided_slice %19 {offsets = [5, 0, 0], sizes = [1, 8, 32], strides = [1, 1, 1]} : vector<8x8x32xf32> to vector<1x8x32xf32>
    %60 = vector.shape_cast %59 : vector<1x8x32xf32> to vector<8x32xf32>
    %61 = vector.shape_cast %60 : vector<8x32xf32> to vector<1x8x32xf32>
    %62 = vector.broadcast %61 : vector<1x8x32xf32> to vector<8x8x32xf32>
    %63 = arith.mulf %10, %62 : vector<8x8x32xf32>
    %cst_19 = arith.constant dense<0.000000e+00> : vector<8x8xf32>
    %64 = vector.multi_reduction <add>, %63, %cst_19 [2] : vector<8x8x32xf32> to vector<8x8xf32>
    %65 = vector.shape_cast %64 : vector<8x8xf32> to vector<8x8x1xf32>
    %66 = arith.maximumf %58, %65 : vector<8x8x1xf32>
    %67 = vector.extract_strided_slice %19 {offsets = [6, 0, 0], sizes = [1, 8, 32], strides = [1, 1, 1]} : vector<8x8x32xf32> to vector<1x8x32xf32>
    %68 = vector.shape_cast %67 : vector<1x8x32xf32> to vector<8x32xf32>
    %69 = vector.shape_cast %68 : vector<8x32xf32> to vector<1x8x32xf32>
    %70 = vector.broadcast %69 : vector<1x8x32xf32> to vector<8x8x32xf32>
    %71 = arith.mulf %10, %70 : vector<8x8x32xf32>
    %cst_20 = arith.constant dense<0.000000e+00> : vector<8x8xf32>
    %72 = vector.multi_reduction <add>, %71, %cst_20 [2] : vector<8x8x32xf32> to vector<8x8xf32>
    %73 = vector.shape_cast %72 : vector<8x8xf32> to vector<8x8x1xf32>
    %74 = arith.maximumf %66, %73 : vector<8x8x1xf32>
    %75 = vector.extract_strided_slice %19 {offsets = [7, 0, 0], sizes = [1, 8, 32], strides = [1, 1, 1]} : vector<8x8x32xf32> to vector<1x8x32xf32>
    %76 = vector.shape_cast %75 : vector<1x8x32xf32> to vector<8x32xf32>
    %77 = vector.shape_cast %76 : vector<8x32xf32> to vector<1x8x32xf32>
    %78 = vector.broadcast %77 : vector<1x8x32xf32> to vector<8x8x32xf32>
    %79 = arith.mulf %10, %78 : vector<8x8x32xf32>
    %cst_21 = arith.constant dense<0.000000e+00> : vector<8x8xf32>
    %80 = vector.multi_reduction <add>, %79, %cst_21 [2] : vector<8x8x32xf32> to vector<8x8xf32>
    %81 = vector.shape_cast %80 : vector<8x8xf32> to vector<8x8x1xf32>
    %82 = arith.maximumf %74, %81 : vector<8x8x1xf32>
    %cst_22 = arith.constant dense<0xFF800000> : vector<8x1xf32>
    %83 = vector.multi_reduction <maximumf>, %82, %cst_22 [0] : vector<8x8x1xf32> to vector<8x1xf32>
    %84 = vector.shape_cast %83 : vector<8x1xf32> to vector<1x8x1xf32>
    %85 = vector.broadcast %84 : vector<1x8x1xf32> to vector<8x8x1xf32>
    %86 = arith.subf %82, %85 : vector<8x8x1xf32>
    %87 = math.exp %86 : vector<8x8x1xf32>
    %cst_23 = arith.constant dense<0.000000e+00> : vector<8x1xf32>
    %88 = vector.multi_reduction <add>, %87, %cst_23 [0] : vector<8x8x1xf32> to vector<8x1xf32>
    %89 = vector.shape_cast %88 : vector<8x1xf32> to vector<1x8x1xf32>
    %90 = tpu.reciprocal %89 : vector<1x8x1xf32> -> vector<1x8x1xf32>
    %91 = vector.broadcast %90 : vector<1x8x1xf32> to vector<8x8x1xf32>
    %92 = arith.mulf %87, %91 : vector<8x8x1xf32>
    %93 = vector.broadcast %92 : vector<8x8x1xf32> to vector<8x8x32xf32>
    %94 = arith.mulf %93, %0 : vector<8x8x32xf32>
    %cst_24 = arith.constant dense<0.000000e+00> : vector<8x32xf32>
    %95 = vector.multi_reduction <add>, %94, %cst_24 [0] : vector<8x8x32xf32> to vector<8x32xf32>
    %c0_25 = arith.constant 0 : index
    %c0_26 = arith.constant 0 : index
    %96 = vector.load %arg7[%c0_25, %c0_26] : memref<8x32xf32, #tpu.memory_space<vmem>>, vector<8x32xf32>
    tpu.vector_store %arg7[%c0_25, %c0_26], %95 {strides = array<i32>} : memref<8x32xf32, #tpu.memory_space<vmem>>, vector<8x32xf32>,
    return
  }
  func.func @transform_0(%arg0: i32) -> (i32, i32, i32) {
    %c0_i32 = arith.constant 0 : i32
    %c0_i32_0 = arith.constant 0 : i32
    %c0_i32_1 = arith.constant 0 : i32
    return %c0_i32, %arg0, %c0_i32_0 : i32, i32, i32
  }
  func.func @transform_1(%arg0: i32) -> (i32, i32, i32) {
    %c0_i32 = arith.constant 0 : i32
    %c0_i32_0 = arith.constant 0 : i32
    %c0_i32_1 = arith.constant 0 : i32
    return %c0_i32, %arg0, %c0_i32_0 : i32, i32, i32
  }
  func.func @transform_2(%arg0: i32) -> (i32, i32) {
    %c0_i32 = arith.constant 0 : i32
    %c0_i32_0 = arith.constant 0 : i32
    %c0_i32_1 = arith.constant 0 : i32
    return %c0_i32, %c0_i32_0 : i32, i32
  }
  func.func @transform_3(%arg0: i32) -> (i32, i32) {
    %c0_i32 = arith.constant 0 : i32
    %c0_i32_0 = arith.constant 0 : i32
    %c0_i32_1 = arith.constant 0 : i32
    return %c0_i32, %c0_i32_0 : i32, i32
  }
  func.func @transform_4(%arg0: i32) -> (i32, i32) {
    %c0_i32 = arith.constant 0 : i32
    %c0_i32_0 = arith.constant 0 : i32
    %c0_i32_1 = arith.constant 0 : i32
    return %c0_i32, %c0_i32_0 : i32, i32
  }
  func.func @transform_5(%arg0: i32) -> (i32, i32) {
    %c0_i32 = arith.constant 0 : i32
    %c0_i32_0 = arith.constant 0 : i32
    %c0_i32_1 = arith.constant 0 : i32
    return %c0_i32, %c0_i32_0 : i32, i32
  }
  func.func @transform_6(%arg0: i32) -> (i32, i32) {
    %c0_i32 = arith.constant 0 : i32
    %c0_i32_0 = arith.constant 0 : i32
    return %arg0, %c0_i32 : i32, i32
  }
}

</mosaic_0001>

<bundles_post_ra>
// kernel: tpu_custom_call.1
= control target key start
LH: loop header
LB: loop body
LE: loop exit
PB: predicated region body
PF: predicated region fallthrough
CT: control target
= control target key end

     0   :  { %vm68_vm0 = vcmask 261120   ;;  %s1312_s0 = inlined_call_operand.vmem [shape: f32[8,6,32], index: 0, kind: input, shape index: {}]   ;;  %s1313_s1 = inlined_call_operand.vmem [shape: f32[8,6,32], index: 1, kind: input, shape index: {}]   ;;  %s1314_s2 = inlined_call_operand.vmem [shape: bf16[32,32], index: 2, kind: input, shape index: {}]   ;;  %s1315_s3 = inlined_call_operand.vmem [shape: f32[1,32], index: 3, kind: input, shape index: {}]   ;;  %s1316_s4 = inlined_call_operand.vmem [shape: bf16[32,32], index: 4, kind: input, shape index: {}]   ;;  %s1317_s5 = inlined_call_operand.vmem [shape: f32[1,32], index: 5, kind: input, shape index: {}]   ;;  %s1318_s6 = inlined_call_operand.hbm [shape: f32[6,32], index: 6, kind: output, shape index: {}]  }
   0x1   :  { %v714_v0 = vld [vmem:[%s1314_s2] sm:$0xff]   ;;  %v716_v2 = vld [vmem:[%s1314_s2 + $0x8] sm:$0xff]   ;;  %v861_v9 = vld [vmem:[%s1312_s0 + $0x10] sm:$0xff] }
   0x2   :  { %v715_v1 = vld [vmem:[%s1316_s4] sm:$0xff]   ;;  %689 = vmatprep.subr.bf16.mxu0 %v714_v0  ;;  %v717_v3 = vld [vmem:[%s1316_s4 + $0x8] sm:$0xff]   ;;  %v866_v10 = vld [vmem:[%s1312_s0 + $0x18] sm:$0xff] }
   0x3   :  { %701 = vmatprep.subr.bf16.mxu1 %v715_v1  ;;  %690 = vmatpush3.bf16.msra.mxu0 %v714_v0  ;;  %v843_v4 = vld [vmem:[%s1312_s0] sm:$0xff]  ;;  %v848_v5 = vld [vmem:[%s1312_s0 + $0x8] sm:$0xff]  ;;  %v42_v12 = vpack.c.bf16 %v866_v10, %v861_v9  ;;  %v35_v13 = vld [vmem:[%s1313_s1 + $0x10] sm:$0xff] }
   0x4   :  { %702 = vmatpush3.bf16.msra.mxu1 %v715_v1  ;;  %691 = vmatprep.subr.bf16.mxu0 %v716_v2  ;;  %v33_v6 = vld [vmem:[%s1313_s1] sm:$0xff]  ;;  %v41_v7 = vpack.c.bf16 %v848_v5, %v843_v4  ;;  %v34_v8 = vld [vmem:[%s1313_s1 + $0x8] sm:$0xff]  ;;  %v36_v14 = vld [vmem:[%s1313_s1 + $0x18] sm:$0xff] }
   0x5   :  { %703 = vmatprep.subr.bf16.mxu1 %v717_v3  ;;  %v154_v11 = vpack.c.bf16 %v34_v8, %v33_v6  ;;  %v879_v15 = vld [vmem:[%s1312_s0 + $0x20] sm:$0xff]  ;;  %v155_v16 = vpack.c.bf16 %v36_v14, %v35_v13  ;;  %v885_v17 = vld [vmem:[%s1312_s0 + $0x28] sm:$0xff] }
   0x6   :  { %693 = vmatprep.mubr.msk.bf16.mxu0 %vm68_vm0, %v41_v7  ;;  %1322 = vst [vmem:[#allocation5_spill] sm:$0xff] %v885_v17  ;;  %v37_v18 = vld [vmem:[%s1313_s1 + $0x20] sm:$0xff]  ;;  %v38_v19 = vld [vmem:[%s1313_s1 + $0x28] sm:$0xff]  ;;  %v43_v20 = vpack.c.bf16 %v885_v17, %v879_v15 }
   0x7   :  { %692 = vmatpush3.bf16.msra.mxu0 %v716_v2  ;;  %705 = vmatprep.mubr.msk.bf16.mxu1 %vm68_vm0, %v154_v11  ;;  %v156_v21 = vpack.c.bf16 %v38_v19, %v37_v18 }
   0x8   :  { %704 = vmatpush3.bf16.msra.mxu1 %v717_v3 }
   0x9   :  { %11 = vsyncpa [#allocation3], 0  ;;  %v902_v22 = vld [vmem:[%s1312_s0 + $0x30] sm:$0xff]  ;;  %v907_v23 = vld [vmem:[%s1312_s0 + $0x38] sm:$0xff] }
   0xa   :  { %694 = vmatmul.mubr.msk.bf16.vlgmr.msra.gmra.mrb[0].mxu0 %vm68_vm0, %v42_v12  ;;  %1323 = vst [vmem:[#allocation6_spill] sm:$0xff] %v902_v22  ;;  %1324 = vst [vmem:[#allocation7_spill] sm:$0xff] %v907_v23  ;;  %v39_v24 = vld [vmem:[%s1313_s1 + $0x30] sm:$0xff]  ;;  %v40_v25 = vld [vmem:[%s1313_s1 + $0x38] sm:$0xff]  ;;  %v44_v26 = vpack.c.bf16 %v907_v23, %v902_v22  ;;  %s792_s1 = smov [#allocation2]  }
   0xb   :  { %706 = vmatmul.mubr.msk.bf16.vlgmr.msra.gmra.mrb[0].mxu1 %vm68_vm0, %v155_v16  ;;  %697 = vmatprep.mubr.msk.bf16.mxu0 %vm68_vm0, %v43_v20  ;;  %v157_v27 = vpack.c.bf16 %v40_v25, %v39_v24  ;;  %v663_v28 = vld [vmem:[%s1315_s3] ss:$0 sm:$0xff]  ;;  %s655_s3 = sshll.u32 %s792_s1, 4  ;;  %s656_s3 = int_to_ptr.vmem [resolvable:$true] %s655_s3 }
   0xc   :  { %709 = vmatprep.mubr.msk.bf16.mxu1 %vm68_vm0, %v156_v21  ;;  %v670_v29 = vld [vmem:[%s1317_s5] ss:$0 sm:$0xff]  ;;  %s768_s5 = scalar_lea.vmem %s656_s3, 128  ;;  %p773_p1 = scmp.lt.s32.totalorder %s656_s3, %s656_s3 }
   0xd   :  { %p769_p0 = scmp.ne.s32.totalorder %s656_s3, %s768_s5  ;;  %p774_p2 = scmp.lt.s32.totalorder %s768_s5, %s768_s5 }
   0xf   :  { %p775_p3 = por %p774_p2, %p773_p1 }
  0x11   :  { %p776_p4 = pnand %p775_p3, %p769_p0 }
  0x12   :  { %698 = vmatmul.mubr.msk.bf16.gmra.mrb[4].mxu0 %vm68_vm0, %v44_v26 }
  0x13   :  { %710 = vmatmul.mubr.msk.bf16.gmra.mrb[4].mxu1 %vm68_vm0, %v157_v27 }
  0xdd   :  { %v695_v30 = vpop.f32.mrb[0].mxu0 }
  0xde   :  { %v124_v31 = vadd.f32 %v695_v30, %v663_v28  ;;  %v707_v32 = vpop.f32.mrb[0].mxu1  ;;  %v115_v33 = vpop.f32.mrb[1].mxu0 }
  0xdf   :  { %v236_v34 = vadd.f32 %v707_v32, %v670_v29  ;;  %v116_v35 = vadd.f32 %v663_v28, %v115_v33  ;;  %v227_v36 = vpop.f32.mrb[1].mxu1  ;;  %v696_v37 = vpop.f32.mrb[2].mxu0 }
  0xe0   :  { %718 = vtanh.f32 %v124_v31  ;;  %v228_v38 = vadd.f32 %v670_v29, %v227_v36  ;;  %v127_v39 = vadd.f32 %v696_v37, %v663_v28  ;;  %v708_v40 = vpop.f32.mrb[2].mxu1  ;;  %v118_v41 = vpop.f32.mrb[3].mxu0 }
  0xe1   :  { %720 = vtanh.f32 %v236_v34  ;;  %v239_v42 = vadd.f32 %v708_v40, %v670_v29  ;;  %v230_v43 = vpop.f32.mrb[3].mxu1  ;;  %v119_v44 = vadd.f32 %v663_v28, %v118_v41 }
  0xe2   :  { %722 = vtanh.f32 %v116_v35  ;;  %v231_v45 = vadd.f32 %v670_v29, %v230_v43 }
  0xe3   :  { %724 = vtanh.f32 %v228_v38 }
  0xe4   :  { %726 = vtanh.f32 %v127_v39 }
  0xe5   :  { %728 = vtanh.f32 %v239_v42  ;;  %v699_v46 = vpop.f32.mrb[4].mxu0 }
  0xe6   :  { %730 = vtanh.f32 %v119_v44  ;;  %v140_v47 = vadd.f32 %v699_v46, %v663_v28  ;;  %v711_v48 = vpop.f32.mrb[4].mxu1  ;;  %v131_v49 = vpop.f32.mrb[5].mxu0 }
  0xe7   :  { %732 = vtanh.f32 %v231_v45  ;;  %v252_v50 = vadd.f32 %v711_v48, %v670_v29  ;;  %v243_v51 = vpop.f32.mrb[5].mxu1  ;;  %v700_v52 = vpop.f32.mrb[6].mxu0  ;;  %v132_v63 = vadd.f32 %v663_v28, %v131_v49 }
  0xe8   :  { %734 = vtanh.f32 %v140_v47  ;;  %v244_v53 = vadd.f32 %v670_v29, %v243_v51  ;;  %v143_v54 = vadd.f32 %v700_v52, %v663_v28  ;;  %v712_v55 = vpop.f32.mrb[6].mxu1  ;;  %v134_v56 = vpop.f32.mrb[7].mxu0 }
  0xe9   :  { %736 = vtanh.f32 %v252_v50  ;;  %v255_v57 = vadd.f32 %v712_v55, %v670_v29  ;;  %v135_v58 = vadd.f32 %v663_v28, %v134_v56  ;;  %v246_v59 = vpop.f32.mrb[7].mxu1 }
  0xea   :  { %v926_v60 = vpop.eup %718  ;;  %v247_v61 = vadd.f32 %v670_v29, %v246_v59  ;;  %738 = vtanh.f32 %v244_v53 }
  0xeb   :  { %v928_v62 = vpop.eup %720  ;;  %740 = vtanh.f32 %v143_v54 }
  0xec   :  { %v930_v0 = vpop.eup %722  ;;  %v340_v1 = vmul.f32 %v928_v62, %v926_v60  ;;  %742 = vtanh.f32 %v132_v63 }
  0xed   :  { %v934_v2 = vpop.eup %724  ;;  %v338_v3 = vmul.f32 %v930_v0, %v928_v62  ;;  %744 = vtanh.f32 %v255_v57 }
  0xee   :  { %v938_v6 = vpop.eup %726  ;;  %v352_v7 = vsel %vm68_vm0, %v340_v1, 0.0  ;;  %v268_v8 = vmul.f32 %v934_v2, %v926_v60  ;;  %v266_v11 = vmul.f32 %v934_v2, %v930_v0  ;;  %746 = vtanh.f32 %v135_v58 }
  0xef   :  { %v945_v12 = vpop.eup %728  ;;  %353 = vadd.xlane.f32.xlu0 %v352_v7  ;;  %v269_v13 = vmul.f32 %v938_v6, %v934_v2  ;;  %v341_v14 = vmul.f32 %v938_v6, %v928_v62  ;;  %v346_v40 = vsel %vm68_vm0, %v338_v3, 0.0  ;;  %748 = vtanh.f32 %v247_v61 }
  0xf0   :  { %v951_v16 = vpop.eup %730  ;;  %v280_v18 = vsel %vm68_vm0, %v268_v8, 0.0  ;;  %v378_v19 = vmul.f32 %v945_v12, %v930_v0  ;;  %v381_v20 = vmul.f32 %v945_v12, %v938_v6  ;;  %v380_v24 = vmul.f32 %v945_v12, %v926_v60 }
  0xf1   :  { %v958_v21 = vpop.eup %732  ;;  %281 = vadd.xlane.f32.xlu1 %v280_v18  ;;  %v267_v25 = vmul.f32 %v951_v16, %v934_v2  ;;  %v274_v27 = vsel %vm68_vm0, %v266_v11, 0.0  ;;  %v979_v32 = vmul.f32 %v951_v16, %v928_v62  ;;  %v283_v33 = vsel %vm68_vm0, %v269_v13, 0.0 }
  0xf2   :  { %v964_v26 = vpop.eup %734  ;;  %v299_v28 = vmul.f32 %v958_v21, %v951_v16  ;;  %v301_v29 = vmul.f32 %v958_v21, %v938_v6  ;;  %v975_v31 = vmul.f32 %v958_v21, %v930_v0  ;;  %v984_v34 = vmul.f32 %v958_v21, %v926_v60 }
  0xf3   :  { %v971_v30 = vpop.eup %736  ;;  %275 = vadd.xlane.f32.xlu0 %v274_v27  ;;  %v988_v35 = vmul.f32 %v951_v16, %v945_v12  ;;  %v992_v37 = vmul.f32 %v964_v26, %v934_v2  ;;  %v1003_v41 = vmul.f32 %v964_v26, %v958_v21  ;;  %v1011_v43 = vmul.f32 %v964_v26, %v928_v62 }
  0xf4   :  { %v739_v36 = vpop.eup %738  ;;  %v996_v38 = vmul.f32 %v971_v30, %v951_v16  ;;  %v1007_v42 = vmul.f32 %v971_v30, %v938_v6  ;;  %v355_v45 = vsel %vm68_vm0, %v341_v14, 0.0  ;;  %v1019_v46 = vmul.f32 %v964_v26, %v945_v12 }
  0xf5   :  { %284 = vadd.xlane.f32.xlu1 %v283_v33  ;;  %v998_v39 = vpop.eup %740  ;;  %v1014_v44 = vmul.f32 %v739_v36, %v951_v16  ;;  %v1022_v47 = vmul.f32 %v739_v36, %v938_v6  ;;  %v1026_v49 = vmul.f32 %v971_v30, %v930_v0  ;;  %v386_v51 = vsel %vm68_vm0, %v378_v19, 0.0 }
  0xf6   :  { %v743_v48 = vpop.eup %742  ;;  %v1030_v50 = vmul.f32 %v998_v39, %v934_v2  ;;  %v1035_v52 = vmul.f32 %v971_v30, %v926_v60  ;;  %v1039_v53 = vmul.f32 %v998_v39, %v958_v21  ;;  %v1043_v54 = vmul.f32 %v971_v30, %v964_v26 }
  0xf7   :  { %347 = vadd.xlane.f32.xlu0 %v346_v40  ;;  %v1047_v55 = vmul.f32 %v998_v39, %v928_v62  ;;  %v745_v56 = vpop.eup %744  ;;  %v395_v57 = vsel %vm68_vm0, %v381_v20, 0.0  ;;  %v1051_v58 = vmul.f32 %v743_v48, %v934_v2  ;;  %v1055_v59 = vmul.f32 %v998_v39, %v945_v12 }
  0xf8   :  { %v1058_v61 = vmul.f32 %v743_v48, %v958_v21  ;;  %v1061_v63 = vmul.f32 %v998_v39, %v739_v36  ;;  %v747_v1 = vpop.eup %746  ;;  %v392_v3 = vsel %vm68_vm0, %v380_v24, 0.0  ;;  %v1065_v7 = vmul.f32 %v743_v48, %v928_v62 }
  0xf9   :  { %356 = vadd.xlane.f32.xlu1 %v355_v45  ;;  %v1069_v8 = vmul.f32 %v998_v39, %v971_v30  ;;  %v1072_v11 = vmul.f32 %v743_v48, %v945_v12  ;;  %v1075_v13 = vmul.f32 %v745_v56, %v951_v16  ;;  %v309_v14 = vsel %vm68_vm0, %v299_v28, 0.0  ;;  %v749_v28 = vpop.eup %748 }
  0xfa   :  { %v1079_v18 = vmul.f32 %v739_v36, %v930_v0  ;;  %v1082_v19 = vmul.f32 %v745_v56, %v938_v6  ;;  %v1085_v20 = vmul.f32 %v739_v36, %v926_v60  ;;  %v1088_v24 = vmul.f32 %v747_v1, %v934_v2 }
  0xfb   :  { %387 = vadd.xlane.f32.xlu0 %v386_v51  ;;  %v277_v27 = vsel %vm68_vm0, %v267_v25, 0.0  ;;  %v1091_v33 = vmul.f32 %v743_v48, %v739_v36  ;;  %v1094_v40 = vmul.f32 %v747_v1, %v958_v21  ;;  %v1097_v45 = vmul.f32 %v739_v36, %v964_v26 }
  0xfc   :  { %v1100_v51 = vmul.f32 %v747_v1, %v928_v62  ;;  %v1104_v2 = vmul.f32 %v743_v48, %v971_v30  ;;  %v1107_v25 = vmul.f32 %v747_v1, %v945_v12  ;;  %v1110_v21 = vmul.f32 %v745_v56, %v930_v0 }
  0xfd   :  { %396 = vadd.xlane.f32.xlu1 %v395_v57  ;;  %v315_v57 = vsel %vm68_vm0, %v301_v29, 0.0  ;;  %v1117_v62 = vmul.f32 %v745_v56, %v926_v60  ;;  %v1120_v29 = vmul.f32 %v749_v28, %v951_v16  ;;  %v1125_v12 = vmul.f32 %v749_v28, %v938_v6 }
  0xfe   :  { %v1132_v23 = vmul.f32 %v749_v28, %v747_v1  ;;  %v1138_v16 = vmul.f32 %v749_v28, %v998_v39  ;;  %v1142_v6 = vmul.f32 %v749_v28, %v743_v48  ;;  %v1145_v22 = vmul.f32 %v747_v1, %v971_v30 }
  0xff   :  { %393 = vadd.xlane.f32.xlu0 %v392_v3  ;;  %v1112_v3 = vmul.f32 %v747_v1, %v739_v36  ;;  %v1130_v36 = vmul.f32 %v749_v28, %v930_v0  ;;  %v1148_v0 = vmul.f32 %v749_v28, %v964_v26  ;;  %v1158_v17 = vmul.f32 %v745_v56, %v998_v39 }
 0x100   :  { %v292_v30 = vsel %vm68_vm0, %v992_v37, 0.0  ;;  %v429_v37 = vsel %vm68_vm0, %v1014_v44, 0.0  ;;  %v435_v39 = vsel %vm68_vm0, %v1022_v47, 0.0  ;;  %v327_v44 = vsel %vm68_vm0, %v1039_v53, 0.0 }
 0x101   :  { %310 = vadd.xlane.f32.xlu1 %v309_v14  ;;  %v306_v14 = vsel %vm68_vm0, %v975_v31, 0.0  ;;  %v1135_v31 = vmul.f32 %v749_v28, %v926_v60  ;;  %v389_v60 = vsel %vm68_vm0, %v988_v35, 0.0  ;;  %v364_v35 = vsel %vm68_vm0, %v1011_v43, 0.0 }
 0x102   :  { %v512_v43 = vsel %vm68_vm0, %v1035_v52, 0.0  ;;  %v367_v47 = vsel %vm68_vm0, %v1047_v55, 0.0  ;;  %v318_v52 = vsel %vm68_vm0, %v1058_v61, 0.0  ;;  %v447_v53 = vsel %vm68_vm0, %v1061_v63, 0.0 }
 0x103   :  { %278 = vadd.xlane.f32.xlu0 %v277_v27  ;;  %v1122_v27 = vmul.f32 %v745_v56, %v743_v48  ;;  %v324_v48 = vsel %vm68_vm0, %v1003_v41, 0.0  ;;  %v506_v41 = vsel %vm68_vm0, %v1026_v49, 0.0  ;;  %v286_v49 = vsel %vm68_vm0, %v1051_v58, 0.0 }
 0x104   :  { %v527_v55 = vsel %vm68_vm0, %v1069_v8, 0.0  ;;  %v549_v58 = vsel %vm68_vm0, %v1075_v13, 0.0  ;;  %v555_v61 = vsel %vm68_vm0, %v1082_v19, 0.0  ;;  %v432_v63 = vsel %vm68_vm0, %v1085_v20, 0.0 }
 0x105   :  { %316 = vadd.xlane.f32.xlu1 %v315_v57  ;;  %v349_v57 = vsel %vm68_vm0, %v979_v32, 0.0  ;;  %v1150_v32 = vmul.f32 %v747_v1, %v745_v56  ;;  %v289_v1 = vsel %vm68_vm0, %v1088_v24, 0.0  ;;  %v321_v8 = vsel %vm68_vm0, %v1094_v40, 0.0 }
 0x106   :  { %v361_v13 = vsel %vm68_vm0, %v1100_v51, 0.0  ;;  %v401_v19 = vsel %vm68_vm0, %v1107_v25, 0.0  ;;  %v546_v20 = vsel %vm68_vm0, %v1110_v21, 0.0  ;;  %v441_v24 = vsel %vm68_vm0, %v1112_v3, 0.0 }
 0x107   :  { %307 = vadd.xlane.f32.xlu0 %v306_v14  ;;  %v312_v14 = vsel %vm68_vm0, %v984_v34, 0.0  ;;  %v509_v34 = vsel %vm68_vm0, %v996_v38, 0.0  ;;  %v404_v38 = vsel %vm68_vm0, %v1019_v46, 0.0  ;;  %v524_v46 = vsel %vm68_vm0, %v1043_v54, 0.0 }
 0x108   :  { %v358_v54 = vsel %vm68_vm0, %v1065_v7, 0.0  ;;  %v438_v7 = vsel %vm68_vm0, %v1091_v33, 0.0  ;;  %v552_v33 = vsel %vm68_vm0, %v1117_v62, 0.0  ;;  %v469_v40 = vsel %vm68_vm0, %v1120_v29, 0.0 }
 0x109   :  { %350 = vadd.xlane.f32.xlu1 %v349_v57  ;;  %v1155_v57 = vmul.f32 %v745_v56, %v964_v26  ;;  %v515_v26 = vsel %vm68_vm0, %v1007_v42, 0.0  ;;  %v295_v42 = vsel %vm68_vm0, %v1030_v50, 0.0  ;;  %v407_v50 = vsel %vm68_vm0, %v1055_v59, 0.0 }
 0x10a   :  { %v398_v56 = vsel %vm68_vm0, %v1072_v11, 0.0  ;;  %v426_v59 = vsel %vm68_vm0, %v1079_v18, 0.0  ;;  %v444_v11 = vsel %vm68_vm0, %v1097_v45, 0.0  ;;  %v518_v18 = vsel %vm68_vm0, %v1104_v2, 0.0 }
 0x10b   :  { %313 = vadd.xlane.f32.xlu0 %v312_v14  ;;  %v558_v28 = vsel %vm68_vm0, %v1122_v27, 0.0  ;;  %v475_v45 = vsel %vm68_vm0, %v1125_v12, 0.0  ;;  %v466_v51 = vsel %vm68_vm0, %v1130_v36, 0.0  ;;  %v481_v2 = vsel %vm68_vm0, %v1132_v23, 0.0 }
 0x10c   :  { %v472_v25 = vsel %vm68_vm0, %v1135_v31, 0.0  ;;  %v487_v21 = vsel %vm68_vm0, %v1138_v16, 0.0  ;;  %v478_v3 = vsel %vm68_vm0, %v1142_v6, 0.0  ;;  %v521_v62 = vsel %vm68_vm0, %v1145_v22, 0.0 }
 0x10d   :  { %390 = vadd.xlane.f32.xlu1 %v389_v60  ;;  %v484_v23 = vsel %vm68_vm0, %v1148_v0, 0.0  ;;  %v561_v29 = vsel %vm68_vm0, %v1150_v32, 0.0  ;;  %v564_v27 = vsel %vm68_vm0, %v1155_v57, 0.0  ;;  %v567_v12 = vsel %vm68_vm0, %v1158_v17, 0.0 }
 0x10f   :  { %293 = vadd.xlane.f32.xlu0 %v292_v30 }
 0x111   :  { %510 = vadd.xlane.f32.xlu1 %v509_v34 }
 0x113   :  { %325 = vadd.xlane.f32.xlu0 %v324_v48 }
 0x115   :  { %516 = vadd.xlane.f32.xlu1 %v515_v26 }
 0x117   :  { %365 = vadd.xlane.f32.xlu0 %v364_v35 }
 0x119   :  { %430 = vadd.xlane.f32.xlu1 %v429_v37 }
 0x11b   :  { %405 = vadd.xlane.f32.xlu0 %v404_v38 }
 0x11d   :  { %436 = vadd.xlane.f32.xlu1 %v435_v39 }
 0x11f   :  { %507 = vadd.xlane.f32.xlu0 %v506_v41 }
 0x121   :  { %296 = vadd.xlane.f32.xlu1 %v295_v42 }
 0x123   :  { %513 = vadd.xlane.f32.xlu0 %v512_v43 }
 0x125   :  { %328 = vadd.xlane.f32.xlu1 %v327_v44 }
 0x127   :  { %525 = vadd.xlane.f32.xlu0 %v524_v46 }
 0x129   :  { %368 = vadd.xlane.f32.xlu1 %v367_v47 }
 0x12b   :  { %287 = vadd.xlane.f32.xlu0 %v286_v49 }
 0x12d   :  { %408 = vadd.xlane.f32.xlu1 %v407_v50 }
 0x12f   :  { %319 = vadd.xlane.f32.xlu0 %v318_v52 }
 0x131   :  { %448 = vadd.xlane.f32.xlu1 %v447_v53 }
 0x133   :  { %359 = vadd.xlane.f32.xlu0 %v358_v54 }
 0x135   :  { %528 = vadd.xlane.f32.xlu1 %v527_v55 }
 0x137   :  { %399 = vadd.xlane.f32.xlu0 %v398_v56 }
 0x139   :  { %550 = vadd.xlane.f32.xlu1 %v549_v58 }
 0x13b   :  { %427 = vadd.xlane.f32.xlu0 %v426_v59 }
 0x13d   :  { %556 = vadd.xlane.f32.xlu1 %v555_v61 }
 0x13f   :  { %433 = vadd.xlane.f32.xlu0 %v432_v63 }
 0x141   :  { %290 = vadd.xlane.f32.xlu1 %v289_v1 }
 0x143   :  { %439 = vadd.xlane.f32.xlu0 %v438_v7 }
 0x145   :  { %322 = vadd.xlane.f32.xlu1 %v321_v8 }
 0x147   :  { %445 = vadd.xlane.f32.xlu0 %v444_v11 }
 0x149   :  { %362 = vadd.xlane.f32.xlu1 %v361_v13 }
 0x14b   :  { %519 = vadd.xlane.f32.xlu0 %v518_v18 }
 0x14d   :  { %402 = vadd.xlane.f32.xlu1 %v401_v19 }
 0x14f   :  { %547 = vadd.xlane.f32.xlu0 %v546_v20 }
 0x151   :  { %442 = vadd.xlane.f32.xlu1 %v441_v24 }
 0x153   :  { %553 = vadd.xlane.f32.xlu0 %v552_v33 }
 0x155   :  { %470 = vadd.xlane.f32.xlu1 %v469_v40 }
 0x157   :  { %559 = vadd.xlane.f32.xlu0 %v558_v28 }
 0x159   :  { %476 = vadd.xlane.f32.xlu1 %v475_v45 }
 0x15b   :  { %467 = vadd.xlane.f32.xlu0 %v466_v51 }
 0x15d   :  { %482 = vadd.xlane.f32.xlu1 %v481_v2 }
 0x15f   :  { %473 = vadd.xlane.f32.xlu0 %v472_v25 }
 0x161   :  { %488 = vadd.xlane.f32.xlu1 %v487_v21 }
 0x163   :  { %479 = vadd.xlane.f32.xlu0 %v478_v3 }
 0x165   :  { %522 = vadd.xlane.f32.xlu1 %v521_v62 }
 0x167   :  { %485 = vadd.xlane.f32.xlu0 %v484_v23 }
 0x169   :  { %562 = vadd.xlane.f32.xlu1 %v561_v29 }
 0x16b   :  { %565 = vadd.xlane.f32.xlu0 %v564_v27 }
 0x16d   :  { %568 = vadd.xlane.f32.xlu1 %v567_v12 }
 0x17c   :  { %v354_v36 = vpop.xlane.xlu0 %353 }
 0x17e   :  { %v282_v31 = vpop.xlane.xlu1 %281 }
 0x180   :  { %v276_v22 = vpop.xlane.xlu0 %275 }
 0x182   :  { %v285_v16 = vpop.xlane.xlu1 %284 }
 0x184   :  { %v348_v14 = vpop.xlane.xlu0 %347 }
 0x186   :  { %v357_v6 = vpop.xlane.xlu1 %356 }
 0x188   :  { %v1256_v0 = vpop.xlane.xlu0 %387 }
 0x18a   :  { %v397_v60 = vpop.xlane.xlu1 %396 }
 0x18c   :  { %v1258_v30 = vpop.xlane.xlu0 %393 }
 0x18e   :  { %v311_v32 = vpop.xlane.xlu1 %310 }
 0x190   :  { %v279_v34 = vpop.xlane.xlu0 %278 }
 0x191   :  { %v331_v48 = vmax.f32 %v279_v34, %v311_v32 }
 0x192   :  { %v317_v57 = vpop.xlane.xlu1 %316 }
 0x193   :  { %v333_v26 = vmax.f32 %v285_v16, %v317_v57 }
 0x194   :  { %v308_v35 = vpop.xlane.xlu0 %307 }
 0x195   :  { %v373_v37 = vmax.f32 %v333_v26, %v357_v6  ;;  %v330_v17 = vmax.f32 %v276_v22, %v308_v35 }
 0x196   :  { %v351_v38 = vpop.xlane.xlu1 %350 }
 0x197   :  { %v370_v39 = vmax.f32 %v330_v17, %v348_v14  ;;  %v371_v41 = vmax.f32 %v331_v48, %v351_v38  ;;  %v413_v42 = vmax.f32 %v373_v37, %v397_v60 }
 0x198   :  { %v314_v43 = vpop.xlane.xlu0 %313 }
 0x199   :  { %v332_v44 = vmax.f32 %v282_v31, %v314_v43  ;;  %v410_v46 = vmax.f32 %v370_v39, %v1256_v0 }
 0x19a   :  { %v391_v47 = vpop.xlane.xlu1 %390 }
 0x19b   :  { %v372_v49 = vmax.f32 %v332_v44, %v354_v36  ;;  %v411_v50 = vmax.f32 %v371_v41, %v391_v47 }
 0x19c   :  { %v294_v52 = vpop.xlane.xlu0 %293 }
 0x19d   :  { %v412_v53 = vmax.f32 %v372_v49, %v1258_v30 }
 0x19e   :  { %v1262_v54 = vpop.xlane.xlu1 %510 }
 0x1a0   :  { %v326_v55 = vpop.xlane.xlu0 %325 }
 0x1a1   :  { %v336_v56 = vmax.f32 %v294_v52, %v326_v55 }
 0x1a2   :  { %v1264_v58 = vpop.xlane.xlu1 %516 }
 0x1a4   :  { %v366_v59 = vpop.xlane.xlu0 %365 }
 0x1a5   :  { %v1266_v61 = vmax.f32 %v336_v56, %v366_v59 }
 0x1a6   :  { %v431_v63 = vpop.xlane.xlu1 %430 }
 0x1a7   :  { %v451_v1 = vmax.f32 %v411_v50, %v431_v63 }
 0x1a8   :  { %v406_v7 = vpop.xlane.xlu0 %405 }
 0x1a9   :  { %v416_v8 = vmax.f32 %v1266_v61, %v406_v7 }
 0x1aa   :  { %v437_v11 = vpop.xlane.xlu1 %436 }
 0x1ab   :  { %v1269_v13 = vmax.f32 %v413_v42, %v437_v11 }
 0x1ac   :  { %v508_v18 = vpop.xlane.xlu0 %507 }
 0x1ae   :  { %v297_v19 = vpop.xlane.xlu1 %296 }
 0x1b0   :  { %v514_v20 = vpop.xlane.xlu0 %513 }
 0x1b2   :  { %v329_v24 = vpop.xlane.xlu1 %328 }
 0x1b3   :  { %v337_v43 = vmax.f32 %v297_v19, %v329_v24 }
 0x1b4   :  { %v1271_v33 = vpop.xlane.xlu0 %525 }
 0x1b6   :  { %v369_v40 = vpop.xlane.xlu1 %368 }
 0x1b7   :  { %v377_v52 = vmax.f32 %v337_v43, %v369_v40 }
 0x1b8   :  { %v288_v28 = vpop.xlane.xlu0 %287 }
 0x1ba   :  { %v409_v45 = vpop.xlane.xlu1 %408 }
 0x1bc   :  { %v320_v51 = vpop.xlane.xlu0 %319 }
 0x1bd   :  { %v334_v35 = vmax.f32 %v288_v28, %v320_v51 }
 0x1be   :  { %v449_v2 = vpop.xlane.xlu1 %448 }
 0x1c0   :  { %v360_v25 = vpop.xlane.xlu0 %359 }
 0x1c1   :  { %v374_v38 = vmax.f32 %v334_v35, %v360_v25 }
 0x1c2   :  { %v1273_v21 = vpop.xlane.xlu1 %528 }
 0x1c4   :  { %v400_v3 = vpop.xlane.xlu0 %399 }
 0x1c5   :  { %v414_v47 = vmax.f32 %v374_v38, %v400_v3 }
 0x1c6   :  { %v551_v62 = vpop.xlane.xlu1 %550 }
 0x1c8   :  { %v428_v23 = vpop.xlane.xlu0 %427 }
 0x1c9   :  { %v450_v57 = vmax.f32 %v410_v46, %v428_v23  ;;  %v417_v46 = vmax.f32 %v377_v52, %v409_v45 }
 0x1ca   :  { %v1275_v29 = vpop.xlane.xlu1 %556 }
 0x1cb   :  { %v457_v51 = vmax.f32 %v417_v46, %v449_v2 }
 0x1cc   :  { %v434_v27 = vpop.xlane.xlu0 %433 }
 0x1cd   :  { %v452_v39 = vmax.f32 %v412_v53, %v434_v27 }
 0x1ce   :  { %v291_v12 = vpop.xlane.xlu1 %290 }
 0x1d0   :  { %v440_v36 = vpop.xlane.xlu0 %439 }
 0x1d1   :  { %v454_v59 = vmax.f32 %v414_v47, %v440_v36 }
 0x1d2   :  { %v323_v31 = vpop.xlane.xlu1 %322 }
 0x1d3   :  { %v335_v41 = vmax.f32 %v291_v12, %v323_v31 }
 0x1d4   :  { %v446_v22 = vpop.xlane.xlu0 %445 }
 0x1d6   :  { %v363_v16 = vpop.xlane.xlu1 %362 }
 0x1d7   :  { %v375_v49 = vmax.f32 %v335_v41, %v363_v16 }
 0x1d8   :  { %v520_v14 = vpop.xlane.xlu0 %519 }
 0x1da   :  { %v403_v6 = vpop.xlane.xlu1 %402 }
 0x1db   :  { %v415_v61 = vmax.f32 %v375_v49, %v403_v6 }
 0x1dc   :  { %v548_v0 = vpop.xlane.xlu0 %547 }
 0x1de   :  { %v443_v60 = vpop.xlane.xlu1 %442 }
 0x1df   :  { %v455_v11 = vmax.f32 %v415_v61, %v443_v60 }
 0x1e0   :  { %v554_v30 = vpop.xlane.xlu0 %553 }
 0x1e2   :  { %v471_v32 = vpop.xlane.xlu1 %470 }
 0x1e3   :  { %v491_v55 = vmax.f32 %v451_v1, %v471_v32 }
 0x1e4   :  { %v560_v34 = vpop.xlane.xlu0 %559 }
 0x1e5   :  { %v531_v53 = vmax.f32 %v491_v55, %v1262_v54 }
 0x1e6   :  { %v477_v48 = vpop.xlane.xlu1 %476 }
 0x1e7   :  { %v493_v19 = vmax.f32 %v1269_v13, %v477_v48  ;;  %v571_v45 = vmax.f32 %v531_v53, %v551_v62 }
 0x1e8   :  { %v468_v26 = vpop.xlane.xlu0 %467 }
 0x1e9   :  { %v490_v37 = vmax.f32 %v450_v57, %v468_v26  ;;  %v533_v31 = vmax.f32 %v493_v19, %v1264_v58 }
 0x1ea   :  { %v483_v17 = vpop.xlane.xlu1 %482 }
 0x1eb   :  { %v530_v42 = vmax.f32 %v490_v37, %v508_v18  ;;  %v456_v18 = vmax.f32 %v416_v8, %v446_v22  ;;  %v495_v24 = vmax.f32 %v455_v11, %v483_v17 }
 0x1ec   :  { %v474_v44 = vpop.xlane.xlu0 %473 }
 0x1ed   :  { %v492_v50 = vmax.f32 %v452_v39, %v474_v44  ;;  %v570_v23 = vmax.f32 %v530_v42, %v548_v0 }
 0x1ee   :  { %v489_v56 = vpop.xlane.xlu1 %488 }
 0x1ef   :  { %v532_v63 = vmax.f32 %v492_v50, %v514_v20  ;;  %v497_v1 = vmax.f32 %v457_v51, %v489_v56 }
 0x1f0   :  { %v480_v7 = vpop.xlane.xlu0 %479 }
 0x1f1   :  { %v494_v28 = vmax.f32 %v454_v59, %v480_v7  ;;  %v572_v22 = vmax.f32 %v532_v63, %v554_v30 }
 0x1f2   :  { %v523_v25 = vpop.xlane.xlu1 %522 }
 0x1f3   :  { %v534_v3 = vmax.f32 %v494_v28, %v520_v14  ;;  %v535_v12 = vmax.f32 %v495_v24, %v523_v25  ;;  %v537_v14 = vmax.f32 %v497_v1, %v1273_v21 }
 0x1f4   :  { %v486_v40 = vpop.xlane.xlu0 %485 }
 0x1f5   :  { %v574_v27 = vmax.f32 %v534_v3, %v560_v34  ;;  %v496_v36 = vmax.f32 %v456_v18, %v486_v40  ;;  %v573_v34 = vmax.f32 %v533_v31, %v1275_v29 }
 0x1f6   :  { %v563_v20 = vpop.xlane.xlu1 %562 }
 0x1f7   :  { %v575_v16 = vmax.f32 %v535_v12, %v563_v20  ;;  %v578_v2 = vmax.f32 %v570_v23, %v574_v27  ;;  %v536_v54 = vmax.f32 %v496_v36, %v1271_v33 }
 0x1f8   :  { %v566_v6 = vpop.xlane.xlu0 %565 }
 0x1f9   :  { %v579_v8 = vmax.f32 %v571_v45, %v575_v16  ;;  %v576_v13 = vmax.f32 %v536_v54, %v566_v6 }
 0x1fa   :  { %v569_v0 = vpop.xlane.xlu1 %568 }
 0x1fb   :  { %v582_v60 = vmax.f32 %v578_v2, %v579_v8  ;;  %v580_v32 = vmax.f32 %v572_v22, %v576_v13  ;;  %v577_v48 = vmax.f32 %v537_v14, %v569_v0  ;;  %v1325_v14 = vld [vmem:[#allocation5_spill] sm:$0xff] }
 0x1fd   :  { %v581_v57 = vmax.f32 %v573_v34, %v577_v48 }
 0x1ff   :  { %v583_v62 = vmax.f32 %v580_v32, %v581_v57 }
 0x201   :  { %v584_v26 = vmax.f32 %v582_v60, %v583_v62 }
 0x203   :  { %v585_v58 = vsub.f32 %v570_v23, %v584_v26  ;;  %v586_v35 = vsub.f32 %v571_v45, %v584_v26  ;;  %v587_v37 = vsub.f32 %v572_v22, %v584_v26  ;;  %v588_v17 = vsub.f32 %v573_v34, %v584_v26  ;;  %v1327_v34 = vld [vmem:[#allocation7_spill] sm:$0xff] }
 0x204   :  { %v591_v33 = vsub.f32 %v576_v13, %v584_v26  ;;  %v592_v38 = vsub.f32 %v577_v48, %v584_v26  ;;  %v589_v41 = vsub.f32 %v574_v27, %v584_v26  ;;  %v590_v21 = vsub.f32 %v575_v16, %v584_v26 }
 0x205   :  { %v593_v39 = vmul.f32 1.442695, %v585_v58  ;;  %v595_v30 = vmul.f32 1.442695, %v586_v35  ;;  %v597_v42 = vmul.f32 1.442695, %v587_v37 }
 0x206   :  { %v599_v43 = vmul.f32 1.442695, %v588_v17  ;;  %v601_v29 = vmul.f32 1.442695, %v589_v41  ;;  %v603_v44 = vmul.f32 1.442695, %v590_v21 }
 0x207   :  { %750 = vpow2.f32 %v593_v39  ;;  %v605_v47 = vmul.f32 1.442695, %v591_v33  ;;  %v607_v49 = vmul.f32 1.442695, %v592_v38 }
 0x208   :  { %752 = vpow2.f32 %v595_v30 }
 0x209   :  { %754 = vpow2.f32 %v597_v42 }
 0x20a   :  { %756 = vpow2.f32 %v599_v43 }
 0x20b   :  { %758 = vpow2.f32 %v601_v29 }
 0x20c   :  { %760 = vpow2.f32 %v603_v44 }
 0x20d   :  { %762 = vpow2.f32 %v605_v47 }
 0x20e   :  { %764 = vpow2.f32 %v607_v49 }
 0x211   :  { %v751_v50 = vpop.eup %750 }
 0x212   :  { %v753_v52 = vpop.eup %752 }
 0x213   :  { %v609_v55 = vadd.f32 %v753_v52, %v751_v50  ;;  %v755_v56 = vpop.eup %754 }
 0x214   :  { %v757_v61 = vpop.eup %756 }
 0x215   :  { %v610_v59 = vadd.f32 %v755_v56, %v609_v55  ;;  %v759_v46 = vpop.eup %758 }
 0x216   :  { %v761_v11 = vpop.eup %760 }
 0x217   :  { %v611_v63 = vadd.f32 %v757_v61, %v610_v59  ;;  %v763_v51 = vpop.eup %762 }
 0x218   :  { %v765_v25 = vpop.eup %764 }
 0x219   :  { %v612_v7 = vadd.f32 %v759_v46, %v611_v63 }
 0x21b   :  { %v613_v28 = vadd.f32 %v761_v11, %v612_v7 }
 0x21d   :  { %v614_v53 = vadd.f32 %v763_v51, %v613_v28 }
 0x21f   :  { %v615_v18 = vadd.f32 %v765_v25, %v614_v53 }
 0x221   :  { %766 = vrcp.f32 %v615_v18 }
 0x22b   :  { %v767_v19 = vpop.eup %766 }
 0x22c   :  { %v617_v24 = vmul.f32 %v767_v19, %v751_v50  ;;  %v618_v3 = vmul.f32 %v767_v19, %v753_v52  ;;  %v619_v23 = vmul.f32 %v767_v19, %v755_v56  ;;  %v620_v40 = vmul.f32 %v767_v19, %v757_v61 }
 0x22d   :  { %v621_v1 = vmul.f32 %v767_v19, %v759_v46  ;;  %v622_v27 = vmul.f32 %v767_v19, %v761_v11  ;;  %v623_v12 = vmul.f32 %v767_v19, %v763_v51  ;;  %v624_v36 = vmul.f32 %v767_v19, %v765_v25 }
 0x22e   :  { %v625_v20 = vmul.f32 %v617_v24, %v843_v4  ;;  %v626_v45 = vmul.f32 %v618_v3, %v848_v5  ;;  %v627_v31 = vmul.f32 %v619_v23, %v861_v9  ;;  %v628_v16 = vmul.f32 %v620_v40, %v866_v10  ;;  %v1326_v5 = vld [vmem:[#allocation6_spill] sm:$0xff] }
 0x22f   :  { %v629_v8 = vmul.f32 %v621_v1, %v879_v15  ;;  %v630_v0 = vmul.f32 %v622_v27, %v1325_v14  ;;  %v631_v32 = vmul.f32 %v623_v12, %v1326_v5  ;;  %v632_v48 = vmul.f32 %v624_v36, %v1327_v34 }
 0x230   :  { %v633_v2 = vsel %vm68_vm0, %v625_v20, 0.0  ;;  %v634_v54 = vsel %vm68_vm0, %v626_v45, 0.0  ;;  %v636_v22 = vsel %vm68_vm0, %v627_v31, 0.0  ;;  %v638_v4 = vsel %vm68_vm0, %v628_v16, 0.0 }
 0x231   :  { %v635_v6 = vadd.f32 %v634_v54, %v633_v2  ;;  %v640_v9 = vsel %vm68_vm0, %v629_v8, 0.0  ;;  %v642_v57 = vsel %vm68_vm0, %v630_v0, 0.0  ;;  %v644_v15 = vsel %vm68_vm0, %v631_v32, 0.0 }
 0x232   :  { %v646_v58 = vsel %vm68_vm0, %v632_v48, 0.0 }
 0x233   :  { %v637_v13 = vadd.f32 %v636_v22, %v635_v6 }
 0x235   :  { %v639_v60 = vadd.f32 %v638_v4, %v637_v13 }
 0x237   :  { %v641_v10 = vadd.f32 %v640_v9, %v639_v60 }
 0x239   :  { %v643_v62 = vadd.f32 %v642_v57, %v641_v10 }
 0x23b   :  { %v645_v26 = vadd.f32 %v644_v15, %v643_v62 }
 0x23d   :  { %v647_v35 = vadd.f32 %v646_v58, %v645_v26 }
 0x23f   :  { %648 = vst.msk [vmem:[#allocation2] sm:$0xff] %vm68_vm0, %v647_v35 }
 0x240   :  { %779 = shalt.err (!%p776_p4)
}
 0x241   :  { %s780_s14 = scalar_lea.hbm %s1318_s6, 128 }
 0x242   :  { %p781_p5 = scmp.ne.s32.totalorder %s1318_s6, %s780_s14  ;;  %p784_p6 = scmp.lt.u32.totalorder %s780_s14, %s1318_s6 }
 0x244   :  { %p786_p7 = pnand %p784_p6, %p781_p5 }
 0x246   :  { %789 = shalt.err (!%p786_p7)
}
 0x247   :  { %658 = dma.vmem_to_hbm [thread:$0]  %s656_s3, 128, %s1318_s6, [#allocation3]  }
 0x248   :  { %790 = dma.done.wait [#allocation3], 128  }
 0x249   :  { %791 = vsyncadd [#allocation3], 4294967168 }
 0x24a   :  { %662 = vsyncpa [#allocation3], 1 }

</bundles_post_ra>
